<compile_context>
chip_gen: v5e
topology: v5e:2x2
jax: 0.10.0
libtpu: 0.0.40
codegen_flags: <defaults>
</compile_context>

<pallas_src>
import functools

import jax
import jax.numpy as jnp
import numpy as np
from jax import lax
from jax.experimental import pallas as pl
from jax.experimental.pallas import tpu as pltpu


# ----------------------------------------------------------------------------
# Pallas kernel: `block_n` images per grid step, channels-first, spatial in
# lanes.  patches layout: [k*Cin + ci, h*W + w] = x_pad[ci, h+ky, w+kx].
# ----------------------------------------------------------------------------
def rmblock_kernel(patch_ref, wf_ref, bf_ref, wd_ref, bd_ref, wu_ref, bu_ref,
                   out_ref, *, rmplanes, cin, hw, block_n):
    inv_hw = 1.0 / float(hw)
    wf = wf_ref[...]            # (cmid, 9*Cin)   folded conv33+conv11+bn00+BN
    bf = bf_ref[...]            # (cmid, 1)       folded bias
    wd = wd_ref[...]            # (cint, Cout)    SE down
    bd = bd_ref[...]            # (cint, 1)
    wu = wu_ref[...]            # (cmid, cint)    SE up
    bu = bu_ref[...]            # (cmid, 1)

    for b in range(block_n):    # static unroll; batch images per grid step
        patches = patch_ref[b]                                  # (9*Cin, HW)

        # One fused MXU matmul, K = 9*Cin, lane-dense N = HW.
        out_mid = lax.dot_general(
            wf, patches, (((1,), (0,)), ((), ())),
            preferred_element_type=jnp.float32) + bf            # (cmid, HW)

        # Lower (pass-through) channels = center tap of the im2col buffer.
        x_lo = patches[4 * cin:4 * cin + rmplanes, :]           # (rmplanes, HW)

        # --- SE: global-avg-pool -> 1x1 down -> relu -> 1x1 up -> sigmoid ----
        pool = jnp.concatenate(
            [jnp.sum(x_lo, axis=1, keepdims=True),
             jnp.sum(out_mid, axis=1, keepdims=True)], axis=0) * inv_hw  # (Cout,1)
        d = jnp.maximum(
            lax.dot_general(wd, pool, (((1,), (0,)), ((), ())),
                            preferred_element_type=jnp.float32) + bd, 0.0)
        u = jax.nn.sigmoid(
            lax.dot_general(wu, d, (((1,), (0,)), ((), ())),
                            preferred_element_type=jnp.float32) + bu)    # (cmid,1)

        # --- final ReLU, two aligned slice stores (no full-size concat) ------
        out_ref[b, :rmplanes, :] = jnp.maximum(x_lo, 0.0).astype(out_ref.dtype)
        out_ref[b, rmplanes:, :] = jnp.maximum(out_mid * u, 0.0).astype(out_ref.dtype)


# ----------------------------------------------------------------------------
# Wrapper-side weight folding: bn33*conv33 + bn11*conv11 (center tap)
#                              + bn00*identity (center tap, upper channels).
# ----------------------------------------------------------------------------
def fold_weights(p, rmplanes, cin):
    cmid = p['w33'].shape[-1]
    assert cin == rmplanes + cmid, "identity branch needs in_planes == out_planes"
    s33, b33 = p['s33'], p['b33']
    s11, b11 = p['s11'], p['b11']
    s00, b00 = p['s00'], p['b00']

    # (3,3,Cin,cmid) HWIO -> (cmid, 9, Cin), scaled by folded bn33
    w33 = jnp.transpose(p['w33'].reshape(9, cin, cmid), (2, 0, 1)) * s33[:, None, None]
    # 1x1 branch folded into the center tap (ky=1, kx=1 -> k=4)
    w11 = jnp.transpose(p['w11'].reshape(cin, cmid), (1, 0)) * s11[:, None]  # (cmid,Cin)
    # bn00 identity branch on the upper channel group
    ident = jnp.zeros((cmid, cin), p['w33'].dtype)
    ident = ident.at[jnp.arange(cmid), rmplanes + jnp.arange(cmid)].set(s00)

    wf = w33.at[:, 4, :].add(w11 + ident).reshape(cmid, 9 * cin)
    bf = (b33 + b11 + b00).reshape(cmid, 1)
    return wf, bf


# ----------------------------------------------------------------------------
# Wrapper
# ----------------------------------------------------------------------------
def rmblock_forward(x_nchw, p, rmplanes, block_n=None):
    N, Cin, H, W = x_nchw.shape
    cmid = p['w33'].shape[-1]
    Cout = rmplanes + cmid
    cint = p['wd'].shape[0]
    HW = H * W

    if block_n is None:   # largest divisor of N that is <= 8
        block_n = next(d for d in range(min(N, 8), 0, -1) if N % d == 0)

    # --- im2col in the wrapper: channels-first, spatial in lanes -------------
    xpad = jnp.pad(x_nchw, ((0, 0), (0, 0), (1, 1), (1, 1)))
    taps = [xpad[:, :, ky:ky + H, kx:kx + W] for ky in range(3) for kx in range(3)]
    patches = jnp.stack(taps, axis=1).reshape(N, 9 * Cin, HW)    # (N, 9*Cin, H*W)

    # --- fold branches + BN into one weight / bias ---------------------------
    wf, bf = fold_weights(p, rmplanes, Cin)
    bd = p['bd'].reshape(cint, 1)
    bu = p['bu'].reshape(cmid, 1)

    def rep_spec(shape):
        nd = len(shape)
        return pl.BlockSpec(shape, lambda i, _nd=nd: (0,) * _nd)

    kernel = functools.partial(rmblock_kernel, rmplanes=rmplanes, cin=Cin,
                               hw=HW, block_n=block_n)

    flops = 2 * N * HW * (9 * Cin) * cmid + 2 * N * (Cout * cint + cint * cmid)
    bytes_accessed = (patches.size + N * Cout * HW + wf.size + bf.size
                      + p['wd'].size + bd.size + p['wu'].size + bu.size) * 4
    cost = pl.CostEstimate(flops=int(flops), transcendentals=int(N * cmid),
                           bytes_accessed=int(bytes_accessed))

    out = pl.pallas_call(
        kernel,
        out_shape=jax.ShapeDtypeStruct((N, Cout, HW), x_nchw.dtype),
        grid=(N // block_n,),
        in_specs=[
            pl.BlockSpec((block_n, 9 * Cin, HW), lambda i: (i, 0, 0)),
            rep_spec((cmid, 9 * Cin)),   # folded conv weight
            rep_spec((cmid, 1)),         # folded bias
            rep_spec((cint, Cout)),      # SE down weight
            rep_spec((cint, 1)),         # SE down bias
            rep_spec((cmid, cint)),      # SE up weight
            rep_spec((cmid, 1)),         # SE up bias
        ],
        out_specs=pl.BlockSpec((block_n, Cout, HW), lambda i: (i, 0, 0)),
        compiler_params=pltpu.CompilerParams(dimension_semantics=("parallel",)),
        cost_estimate=cost,
    )(patches, wf, bf, p['wd'], bd, p['wu'], bu)

    return out.reshape(N, Cout, H, W)                # already NCHW, no transpose


# ----------------------------------------------------------------------------
# Pure-JAX reference (same math, lax conv) for a correctness check.
# ----------------------------------------------------------------------------
def ref_forward(x_nchw, p, rmplanes):
    x = jnp.transpose(x_nchw, (0, 2, 3, 1))
    dn = ('NHWC', 'HWIO', 'NHWC')
    c33 = lax.conv_general_dilated(x, p['w33'], (1, 1), ((1, 1), (1, 1)),
                                   dimension_numbers=dn,
                                   precision=lax.Precision.HIGHEST)
    c11 = lax.conv_general_dilated(x, p['w11'], (1, 1), 'VALID',
                                   dimension_numbers=dn,
                                   precision=lax.Precision.HIGHEST)
    out = c33 * p['s33'] + p['b33']
    out = out + c11 * p['s11'] + p['b11']
    out = out + x[..., rmplanes:] * p['s00'] + p['b00']
    full = jnp.concatenate([x[..., :rmplanes], out], axis=-1)
    pooled = jnp.mean(full, axis=(1, 2), keepdims=True)          # (N,1,1,Cout)
    d = jax.nn.relu(jnp.einsum('nhwc,dc->nhwd', pooled, p['wd']) + p['bd'])
    u = jax.nn.sigmoid(jnp.einsum('nhwd,ud->nhwu', d, p['wu']) + p['bu'])
    se = jnp.concatenate([full[..., :rmplanes], full[..., rmplanes:] * u], axis=-1)
    return jnp.transpose(jax.nn.relu(se), (0, 3, 1, 2))


# ----------------------------------------------------------------------------
# Deterministic parameter construction (shapes per RMBlock.__init__)
# ----------------------------------------------------------------------------
def init_params(key, in_planes, out_planes, ratio):
    rmplanes = int(out_planes * ratio)
    cmid = out_planes - rmplanes
    cint = out_planes // 16
    ks = jax.random.split(key, 12)
    eps = 1e-5

    def bn_fold(k):
        kg, kb, km, kv = jax.random.split(k, 4)
        gamma = 1.0 + 0.1 * jax.random.normal(kg, (cmid,), jnp.float32)
        beta = 0.1 * jax.random.normal(kb, (cmid,), jnp.float32)
        mean = 0.1 * jax.random.normal(km, (cmid,), jnp.float32)
        var = jnp.abs(jax.random.normal(kv, (cmid,), jnp.float32)) + 0.5
        scale = gamma / jnp.sqrt(var + eps)
        bias = beta - mean * scale
        return scale, bias

    s33, b33 = bn_fold(ks[0])
    s11, b11 = bn_fold(ks[1])
    s00, b00 = bn_fold(ks[2])
    p = dict(
        # conv weights in HWIO layout (torch OIHW -> HWIO transpose implied)
        w33=0.1 * jax.random.normal(ks[3], (3, 3, in_planes, cmid), jnp.float32),
        w11=0.1 * jax.random.normal(ks[4], (1, 1, in_planes, cmid), jnp.float32),
        s33=s33, b33=b33, s11=s11, b11=b11, s00=s00, b00=b00,
        # SE: down (Cout -> cint), up (cint -> cmid), stored as (out, in) mats
        wd=0.1 * jax.random.normal(ks[5], (cint, out_planes), jnp.float32),
        bd=0.1 * jax.random.normal(ks[6], (cint,), jnp.float32),
        wu=0.1 * jax.random.normal(ks[7], (cmid, cint), jnp.float32),
        bu=0.1 * jax.random.normal(ks[8], (cmid,), jnp.float32),
    )
    return p, rmplanes


if __name__ == "__main__":
    N, C, H, W = 2, 32, 16, 16           # in_planes == out_planes == 32
    key = jax.random.PRNGKey(0)
    kx, kp = jax.random.split(key)
    x = jax.random.normal(kx, (N, C, H, W), jnp.float32)   # NCHW like PyTorch

    params, rmplanes = init_params(kp, C, C, ratio=0.5)

    out = rmblock_forward(x, params, rmplanes)
    out = jax.block_until_ready(out)

    ref = jax.block_until_ready(ref_forward(x, params, rmplanes))
    assert out.shape == (N, C, H, W)
    np.testing.assert_allclose(np.asarray(out), np.asarray(ref),
                               rtol=1e-2, atol=1e-2)
    print("KERNEL_OK")
</pallas_src>

<mosaic_0001>
module attributes {stable_mosaic.version = 11 : i64} {
  func.func @rmblock_kernel(%arg0: i32, %arg1: memref<2x288x256xf32, #tpu.memory_space<vmem>>, %arg2: memref<16x288xf32, #tpu.memory_space<vmem>>, %arg3: memref<16x1xf32, #tpu.memory_space<vmem>>, %arg4: memref<2x32xf32, #tpu.memory_space<vmem>>, %arg5: memref<2x1xf32, #tpu.memory_space<vmem>>, %arg6: memref<16x2xf32, #tpu.memory_space<vmem>>, %arg7: memref<16x1xf32, #tpu.memory_space<vmem>>, %arg8: memref<2x32x256xf32, #tpu.memory_space<vmem>>) attributes {dimension_semantics = [#tpu.dimension_semantics<parallel>], iteration_bounds = array<i64: 1>, scalar_prefetch = 0 : i64, scratch_operands = 0 : i64, tpu.core_type = #tpu.core_type<tc>, window_params = [{transform_indices = @transform_0, window_bounds = array<i64: 2, 288, 256>}, {pipeline_mode = #tpu.pipeline_mode<synchronous>, transform_indices = @transform_1, window_bounds = array<i64: 16, 288>}, {pipeline_mode = #tpu.pipeline_mode<synchronous>, transform_indices = @transform_2, window_bounds = array<i64: 16, 1>}, {pipeline_mode = #tpu.pipeline_mode<synchronous>, transform_indices = @transform_3, window_bounds = array<i64: 2, 32>}, {pipeline_mode = #tpu.pipeline_mode<synchronous>, transform_indices = @transform_4, window_bounds = array<i64: 2, 1>}, {pipeline_mode = #tpu.pipeline_mode<synchronous>, transform_indices = @transform_5, window_bounds = array<i64: 16, 2>}, {pipeline_mode = #tpu.pipeline_mode<synchronous>, transform_indices = @transform_6, window_bounds = array<i64: 16, 1>}, {transform_indices = @transform_7, window_bounds = array<i64: 2, 32, 256>}]} {
    %c0 = arith.constant 0 : index
    %c0_0 = arith.constant 0 : index
    %0 = vector.load %arg2[%c0, %c0_0] : memref<16x288xf32, #tpu.memory_space<vmem>>, vector<16x288xf32>
    %c0_1 = arith.constant 0 : index
    %c0_2 = arith.constant 0 : index
    %1 = vector.load %arg3[%c0_1, %c0_2] : memref<16x1xf32, #tpu.memory_space<vmem>>, vector<16x1xf32>
    %c0_3 = arith.constant 0 : index
    %c0_4 = arith.constant 0 : index
    %2 = vector.load %arg4[%c0_3, %c0_4] : memref<2x32xf32, #tpu.memory_space<vmem>>, vector<2x32xf32>
    %c0_5 = arith.constant 0 : index
    %c0_6 = arith.constant 0 : index
    %3 = vector.load %arg5[%c0_5, %c0_6] : memref<2x1xf32, #tpu.memory_space<vmem>>, vector<2x1xf32>
    %c0_7 = arith.constant 0 : index
    %c0_8 = arith.constant 0 : index
    %4 = vector.load %arg6[%c0_7, %c0_8] : memref<16x2xf32, #tpu.memory_space<vmem>>, vector<16x2xf32>
    %c0_9 = arith.constant 0 : index
    %c0_10 = arith.constant 0 : index
    %5 = vector.load %arg7[%c0_9, %c0_10] : memref<16x1xf32, #tpu.memory_space<vmem>>, vector<16x1xf32>
    %c0_11 = arith.constant 0 : index
    %c0_12 = arith.constant 0 : index
    %c0_13 = arith.constant 0 : index
    %6 = vector.load %arg1[%c0_11, %c0_12, %c0_13] : memref<2x288x256xf32, #tpu.memory_space<vmem>>, vector<1x288x256xf32>
    %7 = vector.shape_cast %6 : vector<1x288x256xf32> to vector<288x256xf32>
    %cst = arith.constant dense<0.000000e+00> : vector<16x256xf32>
    %8 = tpu.matmul %0, %7, %cst {dimension_numbers = #tpu.dot_dimension_numbers<[1], [0], [0], [1], [0, 0, 1, 1], [], []>} : vector<16x288xf32>, vector<288x256xf32>, vector<16x256xf32> -> vector<16x256xf32>
    %9 = vector.broadcast %1 : vector<16x1xf32> to vector<16x256xf32>
    %10 = arith.addf %8, %9 : vector<16x256xf32>
    %11 = vector.extract_strided_slice %7 {offsets = [128, 0], sizes = [16, 256], strides = [1, 1]} : vector<288x256xf32> to vector<16x256xf32>
    %cst_14 = arith.constant dense<0.000000e+00> : vector<16xf32>
    %12 = vector.multi_reduction <add>, %11, %cst_14 [1] : vector<16x256xf32> to vector<16xf32>
    %13 = vector.shape_cast %12 : vector<16xf32> to vector<16x1xf32>
    %cst_15 = arith.constant dense<0.000000e+00> : vector<16xf32>
    %14 = vector.multi_reduction <add>, %10, %cst_15 [1] : vector<16x256xf32> to vector<16xf32>
    %15 = vector.shape_cast %14 : vector<16xf32> to vector<16x1xf32>
    %16 = tpu.concatenate %13, %15 in 0 : vector<16x1xf32>, vector<16x1xf32> -> vector<32x1xf32>
    %cst_16 = arith.constant 3.906250e-03 : f32
    %17 = vector.broadcast %cst_16 : f32 to vector<32x1xf32>
    %18 = arith.mulf %16, %17 : vector<32x1xf32>
    %cst_17 = arith.constant dense<0.000000e+00> : vector<2x1xf32>
    %19 = tpu.matmul %2, %18, %cst_17 {dimension_numbers = #tpu.dot_dimension_numbers<[1], [0], [0], [1], [0, 0, 1, 1], [], []>} : vector<2x32xf32>, vector<32x1xf32>, vector<2x1xf32> -> vector<2x1xf32>
    %20 = arith.addf %19, %3 : vector<2x1xf32>
    %cst_18 = arith.constant 0.000000e+00 : f32
    %21 = vector.broadcast %cst_18 : f32 to vector<2x1xf32>
    %22 = arith.maximumf %20, %21 : vector<2x1xf32>
    %cst_19 = arith.constant dense<0.000000e+00> : vector<16x1xf32>
    %23 = tpu.matmul %4, %22, %cst_19 {dimension_numbers = #tpu.dot_dimension_numbers<[1], [0], [0], [1], [0, 0, 1, 1], [], []>} : vector<16x2xf32>, vector<2x1xf32>, vector<16x1xf32> -> vector<16x1xf32>
    %24 = arith.addf %23, %5 : vector<16x1xf32>
    %25 = arith.negf %24 : vector<16x1xf32>
    %26 = math.exp %25 : vector<16x1xf32>
    %cst_20 = arith.constant 1.000000e+00 : f32
    %27 = vector.broadcast %cst_20 : f32 to vector<16x1xf32>
    %28 = arith.addf %27, %26 : vector<16x1xf32>
    %29 = arith.divf %27, %28 : vector<16x1xf32>
    %cst_21 = arith.constant 0.000000e+00 : f32
    %30 = vector.broadcast %cst_21 : f32 to vector<16x256xf32>
    %31 = arith.maximumf %11, %30 : vector<16x256xf32>
    %c0_22 = arith.constant 0 : index
    %c0_23 = arith.constant 0 : index
    %c0_24 = arith.constant 0 : index
    %32 = vector.load %arg8[%c0_22, %c0_23, %c0_24] : memref<2x32x256xf32, #tpu.memory_space<vmem>>, vector<1x16x256xf32>
    %33 = vector.shape_cast %32 : vector<1x16x256xf32> to vector<16x256xf32>
    %34 = vector.shape_cast %31 : vector<16x256xf32> to vector<1x16x256xf32>
    tpu.vector_store %arg8[%c0_22, %c0_23, %c0_24], %34 {strides = array<i32>} : memref<2x32x256xf32, #tpu.memory_space<vmem>>, vector<1x16x256xf32>,
    %35 = vector.broadcast %29 : vector<16x1xf32> to vector<16x256xf32>
    %36 = arith.mulf %10, %35 : vector<16x256xf32>
    %cst_25 = arith.constant 0.000000e+00 : f32
    %37 = vector.broadcast %cst_25 : f32 to vector<16x256xf32>
    %38 = arith.maximumf %36, %37 : vector<16x256xf32>
    %c0_26 = arith.constant 0 : index
    %c16 = arith.constant 16 : index
    %c0_27 = arith.constant 0 : index
    %39 = vector.load %arg8[%c0_26, %c16, %c0_27] : memref<2x32x256xf32, #tpu.memory_space<vmem>>, vector<1x16x256xf32>
    %40 = vector.shape_cast %39 : vector<1x16x256xf32> to vector<16x256xf32>
    %41 = vector.shape_cast %38 : vector<16x256xf32> to vector<1x16x256xf32>
    tpu.vector_store %arg8[%c0_26, %c16, %c0_27], %41 {strides = array<i32>} : memref<2x32x256xf32, #tpu.memory_space<vmem>>, vector<1x16x256xf32>,
    %c1 = arith.constant 1 : index
    %c0_28 = arith.constant 0 : index
    %c0_29 = arith.constant 0 : index
    %42 = vector.load %arg1[%c1, %c0_28, %c0_29] : memref<2x288x256xf32, #tpu.memory_space<vmem>>, vector<1x288x256xf32>
    %43 = vector.shape_cast %42 : vector<1x288x256xf32> to vector<288x256xf32>
    %cst_30 = arith.constant dense<0.000000e+00> : vector<16x256xf32>
    %44 = tpu.matmul %0, %43, %cst_30 {dimension_numbers = #tpu.dot_dimension_numbers<[1], [0], [0], [1], [0, 0, 1, 1], [], []>} : vector<16x288xf32>, vector<288x256xf32>, vector<16x256xf32> -> vector<16x256xf32>
    %45 = vector.broadcast %1 : vector<16x1xf32> to vector<16x256xf32>
    %46 = arith.addf %44, %45 : vector<16x256xf32>
    %47 = vector.extract_strided_slice %43 {offsets = [128, 0], sizes = [16, 256], strides = [1, 1]} : vector<288x256xf32> to vector<16x256xf32>
    %cst_31 = arith.constant dense<0.000000e+00> : vector<16xf32>
    %48 = vector.multi_reduction <add>, %47, %cst_31 [1] : vector<16x256xf32> to vector<16xf32>
    %49 = vector.shape_cast %48 : vector<16xf32> to vector<16x1xf32>
    %cst_32 = arith.constant dense<0.000000e+00> : vector<16xf32>
    %50 = vector.multi_reduction <add>, %46, %cst_32 [1] : vector<16x256xf32> to vector<16xf32>
    %51 = vector.shape_cast %50 : vector<16xf32> to vector<16x1xf32>
    %52 = tpu.concatenate %49, %51 in 0 : vector<16x1xf32>, vector<16x1xf32> -> vector<32x1xf32>
    %cst_33 = arith.constant 3.906250e-03 : f32
    %53 = vector.broadcast %cst_33 : f32 to vector<32x1xf32>
    %54 = arith.mulf %52, %53 : vector<32x1xf32>
    %cst_34 = arith.constant dense<0.000000e+00> : vector<2x1xf32>
    %55 = tpu.matmul %2, %54, %cst_34 {dimension_numbers = #tpu.dot_dimension_numbers<[1], [0], [0], [1], [0, 0, 1, 1], [], []>} : vector<2x32xf32>, vector<32x1xf32>, vector<2x1xf32> -> vector<2x1xf32>
    %56 = arith.addf %55, %3 : vector<2x1xf32>
    %cst_35 = arith.constant 0.000000e+00 : f32
    %57 = vector.broadcast %cst_35 : f32 to vector<2x1xf32>
    %58 = arith.maximumf %56, %57 : vector<2x1xf32>
    %cst_36 = arith.constant dense<0.000000e+00> : vector<16x1xf32>
    %59 = tpu.matmul %4, %58, %cst_36 {dimension_numbers = #tpu.dot_dimension_numbers<[1], [0], [0], [1], [0, 0, 1, 1], [], []>} : vector<16x2xf32>, vector<2x1xf32>, vector<16x1xf32> -> vector<16x1xf32>
    %60 = arith.addf %59, %5 : vector<16x1xf32>
    %61 = arith.negf %60 : vector<16x1xf32>
    %62 = math.exp %61 : vector<16x1xf32>
    %cst_37 = arith.constant 1.000000e+00 : f32
    %63 = vector.broadcast %cst_37 : f32 to vector<16x1xf32>
    %64 = arith.addf %63, %62 : vector<16x1xf32>
    %65 = arith.divf %63, %64 : vector<16x1xf32>
    %cst_38 = arith.constant 0.000000e+00 : f32
    %66 = vector.broadcast %cst_38 : f32 to vector<16x256xf32>
    %67 = arith.maximumf %47, %66 : vector<16x256xf32>
    %c1_39 = arith.constant 1 : index
    %c0_40 = arith.constant 0 : index
    %c0_41 = arith.constant 0 : index
    %68 = vector.load %arg8[%c1_39, %c0_40, %c0_41] : memref<2x32x256xf32, #tpu.memory_space<vmem>>, vector<1x16x256xf32>
    %69 = vector.shape_cast %68 : vector<1x16x256xf32> to vector<16x256xf32>
    %70 = vector.shape_cast %67 : vector<16x256xf32> to vector<1x16x256xf32>
    tpu.vector_store %arg8[%c1_39, %c0_40, %c0_41], %70 {strides = array<i32>} : memref<2x32x256xf32, #tpu.memory_space<vmem>>, vector<1x16x256xf32>,
    %71 = vector.broadcast %65 : vector<16x1xf32> to vector<16x256xf32>
    %72 = arith.mulf %46, %71 : vector<16x256xf32>
    %cst_42 = arith.constant 0.000000e+00 : f32
    %73 = vector.broadcast %cst_42 : f32 to vector<16x256xf32>
    %74 = arith.maximumf %72, %73 : vector<16x256xf32>
    %c1_43 = arith.constant 1 : index
    %c16_44 = arith.constant 16 : index
    %c0_45 = arith.constant 0 : index
    %75 = vector.load %arg8[%c1_43, %c16_44, %c0_45] : memref<2x32x256xf32, #tpu.memory_space<vmem>>, vector<1x16x256xf32>
    %76 = vector.shape_cast %75 : vector<1x16x256xf32> to vector<16x256xf32>
    %77 = vector.shape_cast %74 : vector<16x256xf32> to vector<1x16x256xf32>
    tpu.vector_store %arg8[%c1_43, %c16_44, %c0_45], %77 {strides = array<i32>} : memref<2x32x256xf32, #tpu.memory_space<vmem>>, vector<1x16x256xf32>,
    return
  }
  func.func @transform_0(%arg0: i32) -> (i32, i32, i32) {
    %c0_i32 = arith.constant 0 : i32
    %c0_i32_0 = arith.constant 0 : i32
    %c0_i32_1 = arith.constant 0 : i32
    return %arg0, %c0_i32, %c0_i32_0 : i32, i32, i32
  }
  func.func @transform_1(%arg0: i32) -> (i32, i32) {
    %c0_i32 = arith.constant 0 : i32
    %c0_i32_0 = arith.constant 0 : i32
    %c0_i32_1 = arith.constant 0 : i32
    return %c0_i32, %c0_i32_0 : i32, i32
  }
  func.func @transform_2(%arg0: i32) -> (i32, i32) {
    %c0_i32 = arith.constant 0 : i32
    %c0_i32_0 = arith.constant 0 : i32
    %c0_i32_1 = arith.constant 0 : i32
    return %c0_i32, %c0_i32_0 : i32, i32
  }
  func.func @transform_3(%arg0: i32) -> (i32, i32) {
    %c0_i32 = arith.constant 0 : i32
    %c0_i32_0 = arith.constant 0 : i32
    %c0_i32_1 = arith.constant 0 : i32
    return %c0_i32, %c0_i32_0 : i32, i32
  }
  func.func @transform_4(%arg0: i32) -> (i32, i32) {
    %c0_i32 = arith.constant 0 : i32
    %c0_i32_0 = arith.constant 0 : i32
    %c0_i32_1 = arith.constant 0 : i32
    return %c0_i32, %c0_i32_0 : i32, i32
  }
  func.func @transform_5(%arg0: i32) -> (i32, i32) {
    %c0_i32 = arith.constant 0 : i32
    %c0_i32_0 = arith.constant 0 : i32
    %c0_i32_1 = arith.constant 0 : i32
    return %c0_i32, %c0_i32_0 : i32, i32
  }
  func.func @transform_6(%arg0: i32) -> (i32, i32) {
    %c0_i32 = arith.constant 0 : i32
    %c0_i32_0 = arith.constant 0 : i32
    %c0_i32_1 = arith.constant 0 : i32
    return %c0_i32, %c0_i32_0 : i32, i32
  }
  func.func @transform_7(%arg0: i32) -> (i32, i32, i32) {
    %c0_i32 = arith.constant 0 : i32
    %c0_i32_0 = arith.constant 0 : i32
    %c0_i32_1 = arith.constant 0 : i32
    return %arg0, %c0_i32, %c0_i32_0 : i32, i32, i32
  }
}

</mosaic_0001>

<bundles_post_ra>
// kernel: tpu_custom_call.1
= control target key start
LH: loop header
LB: loop body
LE: loop exit
PB: predicated region body
PF: predicated region fallthrough
CT: control target
= control target key end

     0   :  { %12 = vsyncpa [#allocation3], 0  ;;  %s1138_s0 = inlined_call_operand.hbm [shape: f32[2,288,256], index: 0, kind: input, shape index: {}]   ;;  %s1139_s1 = inlined_call_operand.vmem [shape: f32[16,288], index: 1, kind: input, shape index: {}]   ;;  %s1140_s2 = inlined_call_operand.vmem [shape: f32[16,1], index: 2, kind: input, shape index: {}]   ;;  %s1141_s3 = inlined_call_operand.vmem [shape: f32[2,32], index: 3, kind: input, shape index: {}]   ;;  %s1142_s4 = inlined_call_operand.vmem [shape: f32[2,1], index: 4, kind: input, shape index: {}]   ;;  %s1143_s5 = inlined_call_operand.vmem [shape: f32[16,2], index: 5, kind: input, shape index: {}]   ;;  %s1144_s6 = inlined_call_operand.vmem [shape: f32[16,1], index: 6, kind: input, shape index: {}]   ;;  %s1145_s7 = inlined_call_operand.hbm [shape: f32[2,32,256], index: 7, kind: output, shape index: {}]  }
   0x1   :  { %13 = vsyncpa [#allocation4], 0  ;;  %s18_s26 = sshll.u32 %s1138_s0, 4  ;;  %s884_s27 = smov [#allocation2]   ;;  %s19_s26 = int_to_ptr.hbm [resolvable:$true] %s18_s26 }
   0x2   :  { %s20_s28 = sshll.u32 %s884_s27, 4  ;;  %s885_s29 = smov 256   ;;  %s21_s28 = int_to_ptr.vmem [resolvable:$true] %s20_s28 }
   0x3   :  { %s886_s30 = smov 16  }
   0x4   :  { %26 = dma.hbm_to_vmem [thread:$0]  %s19_s26, 18432, %s21_s28, [#allocation3], %s885_s29, %s885_s29, %s886_s30  }
   0x5   :  { %880 = dma.done.wait [#allocation3], 18432  }
   0x6   :  { %881 = vsyncadd [#allocation3], 4294948864  ;;  %v87_v0 = vld [vmem:[#allocation2 + $0xf0] sm:$0xff]  ;;  %v85_v2 = vld [vmem:[#allocation2 + $0xe0] sm:$0xff]  ;;  %vm139_vm0 = vcmask 261120   ;;  %vm331_vm1 = vcmask 1041408  }
   0x7   :  { %v127_v1 = vld [vmem:[#allocation2 + $0x230] sm:$0xff]  ;;  %146 = vmatpush.msra.mxu0 %v87_v0  ;;  %v125_v4 = vld [vmem:[#allocation2 + $0x220] sm:$0xff]  ;;  %v88_v9 = vld [vmem:[#allocation2 + $0xf8] sm:$0xff]  ;;  %vm324_vm2 = vcmask 15360   ;;  %s775_s11 = sshll.u32 %s1145_s7, 4  ;;  %s776_s11 = int_to_ptr.hbm [resolvable:$true] %s775_s11 }
   0x8   :  { %204 = vmatpush.msra.mxu2 %v127_v1  ;;  %v119_v3 = vld [vmem:[#allocation2 + $0x1f0] sm:$0xff]  ;;  %v117_v6 = vld [vmem:[#allocation2 + $0x1e0] sm:$0xff]  ;;  %215 = vmatpush.msra.mxu3 %v88_v9  ;;  %v120_v12 = vld [vmem:[#allocation2 + $0x1f8] sm:$0xff] }
   0x9   :  { %169 = vmatpush.msra.mxu1 %v119_v3  ;;  %v83_v5 = vld [vmem:[#allocation2 + $0xd0] sm:$0xff]  ;;  %147 = vmatpush.msra.mxu0 %v85_v2  ;;  %v81_v10 = vld [vmem:[#allocation2 + $0xc0] sm:$0xff]  ;;  %v86_v14 = vld [vmem:[#allocation2 + $0xe8] sm:$0xff] }
   0xa   :  { %v123_v7 = vld [vmem:[#allocation2 + $0x210] sm:$0xff]  ;;  %205 = vmatpush.msra.mxu2 %v125_v4  ;;  %v121_v11 = vld [vmem:[#allocation2 + $0x200] sm:$0xff]  ;;  %216 = vmatpush.msra.mxu3 %v86_v14  ;;  %v84_v16 = vld [vmem:[#allocation2 + $0xd8] sm:$0xff] }
   0xb   :  { %v115_v8 = vld [vmem:[#allocation2 + $0x1d0] sm:$0xff]  ;;  %170 = vmatpush.msra.mxu1 %v117_v6  ;;  %148 = vmatpush.msra.mxu0 %v83_v5  ;;  %v113_v13 = vld [vmem:[#allocation2 + $0x1c0] sm:$0xff]  ;;  %v118_v17 = vld [vmem:[#allocation2 + $0x1e8] sm:$0xff] }
   0xc   :  { %206 = vmatpush.msra.mxu2 %v123_v7  ;;  %v79_v15 = vld [vmem:[#allocation2 + $0xb0] sm:$0xff]  ;;  %v77_v19 = vld [vmem:[#allocation2 + $0xa0] sm:$0xff]  ;;  %v82_v20 = vld [vmem:[#allocation2 + $0xc8] sm:$0xff]  ;;  %217 = vmatpush.msra.mxu3 %v84_v16 }
   0xd   :  { %171 = vmatpush.msra.mxu1 %v115_v8  ;;  %149 = vmatpush.msra.mxu0 %v81_v10  ;;  %v111_v18 = vld [vmem:[#allocation2 + $0x1b0] sm:$0xff]  ;;  %v116_v21 = vld [vmem:[#allocation2 + $0x1d8] sm:$0xff]  ;;  %v109_v22 = vld [vmem:[#allocation2 + $0x1a0] sm:$0xff] }
   0xe   :  { %207 = vmatpush.msra.mxu2 %v121_v11  ;;  %v75_v23 = vld [vmem:[#allocation2 + $0x90] sm:$0xff]  ;;  %v80_v24 = vld [vmem:[#allocation2 + $0xb8] sm:$0xff]  ;;  %218 = vmatpush.msra.mxu3 %v82_v20  ;;  %v114_v25 = vld [vmem:[#allocation2 + $0x1c8] sm:$0xff] }
   0xf   :  { %172 = vmatpush.msra.mxu1 %v113_v13  ;;  %150 = vmatpush.msra.mxu0 %v79_v15  ;;  %v107_v26 = vld [vmem:[#allocation2 + $0x190] sm:$0xff]  ;;  %v73_v27 = vld [vmem:[#allocation2 + $0x80] sm:$0xff]  ;;  %v78_v28 = vld [vmem:[#allocation2 + $0xa8] sm:$0xff] }
  0x10   :  { %238 = vmatpush.msrb.mxu2 %v120_v12  ;;  %219 = vmatpush.msra.mxu3 %v80_v24  ;;  %v112_v29 = vld [vmem:[#allocation2 + $0x1b8] sm:$0xff]  ;;  %v105_v30 = vld [vmem:[#allocation2 + $0x180] sm:$0xff]  ;;  %v71_v31 = vld [vmem:[#allocation2 + $0x70] sm:$0xff]  ;;  %v887_v12 = vmov 0  }
  0x11   :  { %173 = vmatpush.msra.mxu1 %v111_v18  ;;  %151 = vmatpush.msra.mxu0 %v77_v19  ;;  %v76_v32 = vld [vmem:[#allocation2 + $0x98] sm:$0xff]  ;;  %v110_v33 = vld [vmem:[#allocation2 + $0x1a8] sm:$0xff]  ;;  %v103_v34 = vld [vmem:[#allocation2 + $0x170] sm:$0xff] }
  0x12   :  { %239 = vmatpush.msrb.mxu2 %v118_v17  ;;  %220 = vmatpush.msra.mxu3 %v78_v28  ;;  %v69_v35 = vld [vmem:[#allocation2 + $0x60] sm:$0xff]  ;;  %v74_v36 = vld [vmem:[#allocation2 + $0x88] sm:$0xff]  ;;  %v108_v37 = vld [vmem:[#allocation2 + $0x198] sm:$0xff] }
  0x13   :  { %174 = vmatpush.msra.mxu1 %v109_v22  ;;  %152 = vmatpush.msra.mxu0 %v75_v23  ;;  %v101_v38 = vld [vmem:[#allocation2 + $0x160] sm:$0xff]  ;;  %v67_v39 = vld [vmem:[#allocation2 + $0x50] sm:$0xff]  ;;  %v72_v40 = vld [vmem:[#allocation2 + $0x78] sm:$0xff] }
  0x14   :  { %240 = vmatpush.msrb.mxu2 %v116_v21  ;;  %221 = vmatpush.msra.mxu3 %v76_v32  ;;  %v106_v41 = vld [vmem:[#allocation2 + $0x188] sm:$0xff]  ;;  %v99_v42 = vld [vmem:[#allocation2 + $0x150] sm:$0xff]  ;;  %v65_v44 = vld [vmem:[#allocation2 + $0x40] sm:$0xff] }
  0x15   :  { %175 = vmatpush.msra.mxu1 %v107_v26  ;;  %153 = vmatpush.msra.mxu0 %v73_v27  ;;  %v935_v43 = vld [vmem:[#allocation2 + $0x110] sm:$0xff]  ;;  %v104_v47 = vld [vmem:[#allocation2 + $0x178] sm:$0xff]  ;;  %v97_v48 = vld [vmem:[#allocation2 + $0x140] sm:$0xff] }
  0x16   :  { %241 = vmatpush.msrb.mxu2 %v114_v25  ;;  %222 = vmatpush.msra.mxu3 %v74_v36  ;;  %v940_v45 = vld [vmem:[%s1139_s1 + $0x10] sm:$0xff]  ;;  %v398_v46 = vmax.f32 %v935_v43, 0.0  ;;  %v943_v49 = vld [vmem:[#allocation2 + $0x100] sm:$0xff]  ;;  %v70_v51 = vld [vmem:[#allocation2 + $0x68] sm:$0xff] }
  0x17   :  { %176 = vmatpush.msra.mxu1 %v105_v30  ;;  %154 = vmatpush.msra.mxu0 %v71_v31  ;;  %v63_v50 = vld [vmem:[#allocation2 + $0x30] sm:$0xff]  ;;  %v396_v52 = vmax.f32 %v943_v49, 0.0  ;;  %v102_v53 = vld [vmem:[#allocation2 + $0x168] sm:$0xff]  ;;  %v948_v55 = vld [vmem:[#allocation2 + $0x118] sm:$0xff] }
  0x18   :  { %242 = vmatpush.msrb.mxu2 %v112_v29  ;;  %223 = vmatpush.msra.mxu3 %v72_v40  ;;  %402 = vst [vmem:[#allocation5 + $0x10] sm:$0xff] %v398_v46  ;;  %v95_v54 = vld [vmem:[#allocation2 + $0x130] sm:$0xff]  ;;  %v61_v56 = vld [vmem:[#allocation2 + $0x20] sm:$0xff]  ;;  %v68_v57 = vld [vmem:[#allocation2 + $0x58] sm:$0xff]  ;;  %v399_v58 = vmax.f32 %v948_v55, 0.0 }
  0x19   :  { %177 = vmatpush.msra.mxu1 %v103_v34  ;;  %155 = vmatpush.msra.mxu0 %v69_v35  ;;  %400 = vst [vmem:[#allocation5] sm:$0xff] %v396_v52  ;;  %v951_v59 = vld [vmem:[#allocation2 + $0x108] sm:$0xff]  ;;  %v100_v60 = vld [vmem:[#allocation2 + $0x158] sm:$0xff]  ;;  %v93_v61 = vld [vmem:[#allocation2 + $0x120] sm:$0xff] }
  0x1a   :  { %243 = vmatpush.msrb.mxu2 %v110_v33  ;;  %224 = vmatpush.msra.mxu3 %v70_v51  ;;  %v397_v62 = vmax.f32 %v951_v59, 0.0  ;;  %v59_v63 = vld [vmem:[#allocation2 + $0x10] sm:$0xff]  ;;  %v66_v0 = vld [vmem:[#allocation2 + $0x48] sm:$0xff]  ;;  %403 = vst [vmem:[#allocation5 + $0x18] sm:$0xff] %v399_v58  ;;  %v57_v2 = vld [vmem:[#allocation2] sm:$0xff] }
  0x1b   :  { %178 = vmatpush.msra.mxu1 %v101_v38  ;;  %156 = vmatpush.msra.mxu0 %v67_v39  ;;  %v98_v1 = vld [vmem:[#allocation2 + $0x148] sm:$0xff]  ;;  %v64_v3 = vld [vmem:[#allocation2 + $0x38] sm:$0xff]  ;;  %v957_v4 = vld [vmem:[%s1139_s1] sm:$0xff] }
  0x1c   :  { %244 = vmatpush.msrb.mxu2 %v108_v37  ;;  %225 = vmatpush.msra.mxu3 %v68_v57  ;;  %401 = vst [vmem:[#allocation5 + $0x8] sm:$0xff] %v397_v62  ;;  %v962_v5 = vld [vmem:[%s1139_s1 + $0x28] sm:$0xff]  ;;  %v96_v6 = vld [vmem:[#allocation2 + $0x138] sm:$0xff]  ;;  %v457_v15 = vld [vmem:[#allocation2 + $0x330] sm:$0xff] }
  0x1d   :  { %179 = vmatpush.msra.mxu1 %v99_v42  ;;  %157 = vmatpush.msra.mxu0 %v65_v44  ;;  %v62_v7 = vld [vmem:[#allocation2 + $0x28] sm:$0xff]  ;;  %v60_v10 = vld [vmem:[#allocation2 + $0x18] sm:$0xff]  ;;  %v455_v18 = vld [vmem:[#allocation2 + $0x320] sm:$0xff] }
  0x1e   :  { %245 = vmatpush.msrb.mxu2 %v106_v41  ;;  %226 = vmatpush.msra.mxu3 %v66_v0  ;;  %v971_v8 = vld [vmem:[%s1139_s1 + $0x8] sm:$0xff]  ;;  %v128_v13 = vld [vmem:[#allocation2 + $0x238] sm:$0xff]  ;;  %v990_v19 = vld [vmem:[%s1139_s1 + $0x20] sm:$0xff]  ;;  %v284_v0 = vadd.f32 %v951_v59, %v943_v49 }
  0x1f   :  { %788 = vmatmul.msk.f32.vlgmr.msra.gmra.mxu2 %vm139_vm0, %v940_v45  ;;  %180 = vmatpush.msra.mxu1 %v97_v48  ;;  %v94_v9 = vld [vmem:[#allocation2 + $0x128] sm:$0xff]  ;;  %v982_v16 = vld [vmem:[%s1139_s1 + $0x18] sm:$0xff]  ;;  %v49_v21 = vld [vmem:[%s1140_s2] sm:$0xff] }
  0x20   :  { %246 = vmatpush.msrb.mxu2 %v104_v47  ;;  %158 = vmatpush.msra.mxu0 %v63_v50  ;;  %v50_v11 = vld [vmem:[%s1140_s2 + $0x8] sm:$0xff]  ;;  %v124_v20 = vld [vmem:[#allocation2 + $0x218] sm:$0xff]  ;;  %v453_v22 = vld [vmem:[#allocation2 + $0x310] sm:$0xff] }
  0x21   :  { %181 = vmatpush.msra.mxu1 %v95_v54  ;;  %227 = vmatpush.msra.mxu3 %v64_v3  ;;  %v58_v14 = vld [vmem:[#allocation2 + $0x8] sm:$0xff]  ;;  %v996_v24 = vld [vmem:[#allocation2 + $0x350] sm:$0xff]  ;;  %v451_v25 = vld [vmem:[#allocation2 + $0x300] sm:$0xff] }
  0x22   :  { %247 = vmatpush.msrb.mxu2 %v102_v53  ;;  %159 = vmatpush.msra.mxu0 %v61_v56  ;;  %v126_v17 = vld [vmem:[#allocation2 + $0x228] sm:$0xff]  ;;  %v489_v26 = vld [vmem:[#allocation2 + $0x430] sm:$0xff]  ;;  %v740_v27 = vmax.f32 %v996_v24, 0.0  ;;  %v1000_v28 = vld [vmem:[#allocation2 + $0x340] sm:$0xff] }
  0x23   :  { %182 = vmatpush.msra.mxu1 %v93_v61  ;;  %228 = vmatpush.msra.mxu3 %v62_v7  ;;  %v122_v23 = vld [vmem:[#allocation2 + $0x208] sm:$0xff]  ;;  %v449_v29 = vld [vmem:[#allocation2 + $0x2f0] sm:$0xff]  ;;  %v738_v30 = vmax.f32 %v1000_v28, 0.0  ;;  %v487_v31 = vld [vmem:[#allocation2 + $0x420] sm:$0xff]  ;;  %v287_v61 = vadd.f32 %v948_v55, %v935_v43 }
  0x24   :  { %248 = vmatpush.msrb.mxu2 %v100_v60  ;;  %160 = vmatpush.msra.mxu0 %v59_v63  ;;  %745 = vst [vmem:[#allocation5 + $0x50] sm:$0xff] %v740_v27  ;;  %v447_v32 = vld [vmem:[#allocation2 + $0x2e0] sm:$0xff]  ;;  %v485_v33 = vld [vmem:[#allocation2 + $0x410] sm:$0xff] }
  0x25   :  { %183 = vmatpush.msra.mxu1 %v935_v43  ;;  %813 = vset.pattern.permute.xlu0 %v887_v12  ;;  %743 = vst [vmem:[#allocation5 + $0x40] sm:$0xff] %v738_v30  ;;  %v445_v34 = vld [vmem:[#allocation2 + $0x2d0] sm:$0xff]  ;;  %v483_v35 = vld [vmem:[#allocation2 + $0x400] sm:$0xff] }
  0x26   :  { %249 = vmatpush.msrb.mxu2 %v98_v1  ;;  %161 = vmatpush.msra.mxu0 %v57_v2  ;;  %v443_v36 = vld [vmem:[#allocation2 + $0x2c0] sm:$0xff]  ;;  %v481_v37 = vld [vmem:[#allocation2 + $0x3f0] sm:$0xff] }
  0x27   :  { %162 = vmatmul.f32.vlgmr.msra.gmra.mxu0 %v957_v4  ;;  %789 = vmatmul.msk.f32.gmra.mxu2 %vm139_vm0, %v962_v5  ;;  %v441_v38 = vld [vmem:[#allocation2 + $0x2b0] sm:$0xff]  ;;  %v479_v39 = vld [vmem:[#allocation2 + $0x3e0] sm:$0xff] }
  0x28   :  { %250 = vmatpush.msrb.mxu2 %v96_v6  ;;  %184 = vmatpush.msra.mxu1 %v943_v49  ;;  %v439_v40 = vld [vmem:[#allocation2 + $0x2a0] sm:$0xff]  ;;  %v477_v41 = vld [vmem:[#allocation2 + $0x3d0] sm:$0xff] }
  0x29   :  { %185 = vmatmul.f32.vlgmr.msra.gmra.mxu1 %v971_v8  ;;  %229 = vmatpush.msra.mxu3 %v60_v10  ;;  %v437_v42 = vld [vmem:[#allocation2 + $0x290] sm:$0xff]  ;;  %v475_v44 = vld [vmem:[#allocation2 + $0x3c0] sm:$0xff] }
  0x2a   :  { %251 = vmatpush.msrb.mxu2 %v94_v9  ;;  %136 = vperm.xlu0 %813, %v50_v11   ;;  %v435_v46 = vld [vmem:[#allocation2 + $0x280] sm:$0xff]  ;;  %v473_v47 = vld [vmem:[#allocation2 + $0x3b0] sm:$0xff] }
  0x2b   :  { %273 = vmatpush.msrb.mxu0 %v128_v13  ;;  %230 = vmatpush.msra.mxu3 %v58_v14  ;;  %v433_v48 = vld [vmem:[#allocation2 + $0x270] sm:$0xff]  ;;  %v471_v50 = vld [vmem:[#allocation2 + $0x3a0] sm:$0xff] }
  0x2c   :  { %252 = vmatpush.msrb.mxu2 %v948_v55  ;;  %814 = vset.pattern.permute.xlu2 %v887_v12  ;;  %v431_v51 = vld [vmem:[#allocation2 + $0x260] sm:$0xff]  ;;  %v469_v52 = vld [vmem:[#allocation2 + $0x390] sm:$0xff] }
  0x2d   :  { %231 = vmatmul.f32.vlgmr.msra.gmra.mxu3 %v957_v4  ;;  %274 = vmatpush.msrb.mxu0 %v126_v17  ;;  %v429_v53 = vld [vmem:[#allocation2 + $0x250] sm:$0xff]  ;;  %v467_v54 = vld [vmem:[#allocation2 + $0x380] sm:$0xff] }
  0x2e   :  { %253 = vmatpush.msrb.mxu2 %v951_v59  ;;  %815 = vset.pattern.permute.xlu1 %v887_v12  ;;  %v427_v56 = vld [vmem:[#allocation2 + $0x240] sm:$0xff]  ;;  %v465_v57 = vld [vmem:[#allocation2 + $0x370] sm:$0xff] }
  0x2f   :  { %165 = vmatmul.f32.gmra.mxu0 %v982_v16  ;;  %254 = vmatmul.f32.vlgmr.msrb.gmra.mxu2 %v971_v8  ;;  %v463_v58 = vld [vmem:[#allocation2 + $0x360] sm:$0xff] }
  0x30   :  { %499 = vmatpush.msra.mxu2 %v457_v15  ;;  %275 = vmatpush.msrb.mxu0 %v124_v20 }
  0x31   :  { %188 = vmatmul.f32.gmra.mxu1 %v990_v19  ;;  %288 = vadd.xlane.f32.xlu2 %v287_v61  ;;  %v498_v61 = vld [vmem:[#allocation2 + $0x478] sm:$0xff] }
  0x32   :  { %500 = vmatpush.msra.mxu2 %v455_v18  ;;  %131 = vperm.xlu0 %813, %v49_v21  }
  0x33   :  { %276 = vmatpush.msrb.mxu0 %v122_v23 }
  0x34   :  { %501 = vmatpush.msra.mxu2 %v453_v22 }
  0x35   :  { %522 = vmatpush.msra.mxu0 %v489_v26  ;;  %234 = vmatmul.f32.gmra.mxu3 %v982_v16 }
  0x36   :  { %502 = vmatpush.msra.mxu2 %v451_v25 }
  0x37   :  { %790 = vmatmul.msk.f32.vlgmr.msrb.gmra.mxu0 %vm139_vm0, %v940_v45  ;;  %257 = vmatmul.f32.gmra.mxu2 %v990_v19 }
  0x38   :  { %503 = vmatpush.msra.mxu2 %v449_v29  ;;  %523 = vmatpush.msra.mxu0 %v487_v31 }
  0x39   :  { %285 = vadd.xlane.f32.xlu2 %v284_v0  ;;  %v458_v0 = vld [vmem:[#allocation2 + $0x338] sm:$0xff] }
  0x3a   :  { %504 = vmatpush.msra.mxu2 %v447_v32  ;;  %524 = vmatpush.msra.mxu0 %v485_v33 }
  0x3c   :  { %505 = vmatpush.msra.mxu2 %v445_v34  ;;  %525 = vmatpush.msra.mxu0 %v483_v35 }
  0x3e   :  { %506 = vmatpush.msra.mxu2 %v443_v36  ;;  %526 = vmatpush.msra.mxu0 %v481_v37  ;;  %v1042_v37 = vld [vmem:[%s1141_s3] sm:$0x3] }
  0x3f   :  { %791 = vmatmul.msk.f32.gmra.mxu0 %vm139_vm0, %v962_v5 }
  0x40   :  { %507 = vmatpush.msra.mxu2 %v441_v38  ;;  %527 = vmatpush.msra.mxu0 %v479_v39  ;;  %v497_v38 = vld [vmem:[#allocation2 + $0x470] sm:$0xff]  ;;  %v495_v39 = vld [vmem:[#allocation2 + $0x460] sm:$0xff] }
  0x42   :  { %508 = vmatpush.msra.mxu2 %v439_v40  ;;  %528 = vmatpush.msra.mxu0 %v477_v41  ;;  %v493_v40 = vld [vmem:[#allocation2 + $0x450] sm:$0xff]  ;;  %v491_v41 = vld [vmem:[#allocation2 + $0x440] sm:$0xff] }
  0x44   :  { %509 = vmatpush.msra.mxu2 %v437_v42  ;;  %529 = vmatpush.msra.mxu0 %v475_v44  ;;  %v490_v42 = vld [vmem:[#allocation2 + $0x438] sm:$0xff]  ;;  %v488_v44 = vld [vmem:[#allocation2 + $0x428] sm:$0xff] }
  0x46   :  { %510 = vmatpush.msra.mxu2 %v435_v46  ;;  %530 = vmatpush.msra.mxu0 %v473_v47  ;;  %v486_v46 = vld [vmem:[#allocation2 + $0x418] sm:$0xff]  ;;  %v484_v47 = vld [vmem:[#allocation2 + $0x408] sm:$0xff] }
  0x48   :  { %511 = vmatpush.msra.mxu2 %v433_v48  ;;  %531 = vmatpush.msra.mxu0 %v471_v50  ;;  %v482_v48 = vld [vmem:[#allocation2 + $0x3f8] sm:$0xff]  ;;  %v480_v50 = vld [vmem:[#allocation2 + $0x3e8] sm:$0xff] }
  0x4a   :  { %512 = vmatpush.msra.mxu2 %v431_v51  ;;  %532 = vmatpush.msra.mxu0 %v469_v52  ;;  %v478_v51 = vld [vmem:[#allocation2 + $0x3d8] sm:$0xff]  ;;  %v476_v52 = vld [vmem:[#allocation2 + $0x3c8] sm:$0xff] }
  0x4c   :  { %513 = vmatpush.msra.mxu2 %v429_v53  ;;  %533 = vmatpush.msra.mxu0 %v467_v54  ;;  %v1053_v53 = vld [vmem:[%s1142_s4] sm:$0x3]  ;;  %v474_v54 = vld [vmem:[#allocation2 + $0x3b8] sm:$0xff] }
  0x4e   :  { %514 = vmatpush.msra.mxu2 %v427_v56  ;;  %534 = vmatpush.msra.mxu0 %v465_v57  ;;  %v472_v57 = vld [vmem:[#allocation2 + $0x3a8] sm:$0xff] }
  0x4f   :  { %515 = vmatmul.f32.vlgmr.msra.gmra.mxu2 %v957_v4 }
  0x50   :  { %535 = vmatpush.msra.mxu0 %v463_v58  ;;  %626 = vmatpush.msrb.mxu2 %v498_v61 }
  0x52   :  { %536 = vmatpush.msra.mxu0 %v996_v24 }
  0x54   :  { %537 = vmatpush.msra.mxu0 %v1000_v28 }
  0x55   :  { %538 = vmatmul.f32.vlgmr.msra.gmra.mxu0 %v971_v8 }
  0x57   :  { %518 = vmatmul.f32.gmra.mxu2 %v982_v16 }
  0x5d   :  { %541 = vmatmul.f32.gmra.mxu0 %v990_v19 }
  0x9c   :  { %v1019_v3 = vpop.permute.xlu0 %136 }
  0xa2   :  { %v209_v60 = vpop.f32.mrf.mxu2 }
  0xa4   :  { %v163_v62 = vpop.f32.mrf.mxu0  ;;  %v1023_v55 = vpop.permute.xlu0 %131 }
  0xa5   :  { %v164_v17 = vadd.f32 %v163_v62, %v1023_v55  ;;  %v289_v29 = vpop.xlane.xlu2 %288 }
  0xa6   :  { %v186_v2 = vpop.f32.mrf.mxu1  ;;  %v297_v35 = vmul.f32 0.00390625, %v289_v29  ;;  %v440_v29 = vld [vmem:[#allocation2 + $0x2a8] sm:$0xff] }
  0xa7   :  { %v187_v23 = vadd.f32 %v186_v2, %v164_v17  ;;  %v496_v2 = vld [vmem:[#allocation2 + $0x468] sm:$0xff]  ;;  %v450_v17 = vld [vmem:[#allocation2 + $0x2f8] sm:$0xff] }
  0xa8   :  { %627 = vmatpush.msrb.mxu2 %v496_v2 }
  0xa9   :  { %v1035_v26 = vadd.f32 %v209_v60, %v187_v23  ;;  %v470_v60 = vld [vmem:[#allocation2 + $0x398] sm:$0xff] }
  0xaa   :  { %v212_v63 = vpop.f32.mrf.mxu2  ;;  %v446_v23 = vld [vmem:[#allocation2 + $0x2d8] sm:$0xff] }
  0xac   :  { %v166_v1 = vpop.f32.mrf.mxu0 }
  0xad   :  { %v167_v10 = vadd.f32 %v166_v1, %v1019_v3  ;;  %v286_v33 = vpop.xlane.xlu2 %285  ;;  %v468_v1 = vld [vmem:[#allocation2 + $0x388] sm:$0xff] }
  0xae   :  { %v189_v11 = vpop.f32.mrf.mxu1  ;;  %v296_v36 = vmul.f32 0.00390625, %v286_v33  ;;  %v428_v33 = vld [vmem:[#allocation2 + $0x248] sm:$0xff] }
  0xaf   :  { %v190_v13 = vadd.f32 %v189_v11, %v167_v10  ;;  %v464_v10 = vld [vmem:[#allocation2 + $0x368] sm:$0xff] }
  0xb0   :  { %v232_v6 = vpop.f32.mrf.mxu3  ;;  %v492_v11 = vld [vmem:[#allocation2 + $0x448] sm:$0xff] }
  0xb1   :  { %v233_v49 = vadd.f32 %v232_v6, %v1023_v55  ;;  %v1029_v20 = vadd.f32 %v212_v63, %v190_v13  ;;  %v1059_v63 = vld [vmem:[%s1143_s5] sm:$0xff]  ;;  %v456_v6 = vld [vmem:[#allocation2 + $0x328] sm:$0xff] }
  0xb2   :  { %v255_v7 = vpop.f32.mrf.mxu2  ;;  %v1064_v13 = vld [vmem:[#allocation2 + $0x348] sm:$0xff] }
  0xb3   :  { %v256_v21 = vadd.f32 %v255_v7, %v233_v49  ;;  %v466_v7 = vld [vmem:[#allocation2 + $0x378] sm:$0xff]  ;;  %v739_v49 = vmax.f32 %v1064_v13, 0.0 }
  0xb4   :  { %v278_v9 = vpop.f32.mrf.mxu0 }
  0xb5   :  { %v1033_v25 = vadd.f32 %v278_v9, %v256_v21  ;;  %v494_v9 = vld [vmem:[#allocation2 + $0x458] sm:$0xff]  ;;  %744 = vst [vmem:[#allocation5 + $0x48] sm:$0xff] %v739_v49  ;;  %v448_v21 = vld [vmem:[#allocation2 + $0x2e8] sm:$0xff] }
  0xb6   :  { %628 = vmatpush.msrb.mxu2 %v494_v9 }
  0xb7   :  { %v290_v27 = vadd.f32 %v1033_v25, %v1035_v26 }
  0xb8   :  { %v235_v12 = vpop.f32.mrf.mxu3  ;;  %629 = vmatpush.msrb.mxu2 %v492_v11 }
  0xb9   :  { %v236_v43 = vadd.f32 %v235_v12, %v1019_v3  ;;  %v462_v12 = vld [vmem:[#allocation2 + $0x358] sm:$0xff]  ;;  %800 = vmatmul.msk.f32.vlgmr.msrb.gmra.mxu2 %vm139_vm0, %v940_v45 }
  0xba   :  { %v258_v14 = vpop.f32.mrf.mxu2 }
  0xbb   :  { %v259_v59 = vadd.f32 %v258_v14, %v236_v43  ;;  %v454_v43 = vld [vmem:[#allocation2 + $0x318] sm:$0xff]  ;;  %v741_v14 = vmax.f32 %v462_v12, 0.0 }
  0xbc   :  { %v281_v15 = vpop.f32.mrf.mxu0 }
  0xbd   :  { %v1027_v18 = vadd.f32 %v281_v15, %v259_v59  ;;  %v452_v59 = vld [vmem:[#allocation2 + $0x308] sm:$0xff]  ;;  %746 = vst [vmem:[#allocation5 + $0x58] sm:$0xff] %v741_v14 }
  0xbe   :  { %v1070_v15 = vld [vmem:[%s1143_s5 + $0x8] sm:$0xff] }
  0xbf   :  { %v293_v22 = vadd.f32 %v1027_v18, %v1029_v20 }
  0xc1   :  { %294 = vadd.xlane.f32.xlu1 %v293_v22  ;;  %v640_v22 = vadd.f32 %v462_v12, %v996_v24  ;;  %801 = vmatmul.msk.f32.gmra.mxu2 %vm139_vm0, %v962_v5  ;;  %v436_v24 = vld [vmem:[#allocation2 + $0x288] sm:$0xff] }
  0xc3   :  { %641 = vadd.xlane.f32.xlu2 %v640_v22 }
  0xc9   :  { %291 = vadd.xlane.f32.xlu1 %v290_v27  ;;  %v444_v27 = vld [vmem:[#allocation2 + $0x2c8] sm:$0xff] }
 0x134   :  { %v295_v30 = vpop.xlane.xlu1 %294 }
 0x135   :  { %v299_v31 = vmul.f32 0.00390625, %v295_v30  ;;  %v438_v30 = vld [vmem:[#allocation2 + $0x298] sm:$0xff] }
 0x137   :  { %315 = vmatpush.msrb.mxu1 %v299_v31  ;;  %v434_v31 = vld [vmem:[#allocation2 + $0x278] sm:$0xff] }
 0x13c   :  { %v292_v32 = vpop.xlane.xlu1 %291 }
 0x13d   :  { %v298_v34 = vmul.f32 0.00390625, %v292_v32  ;;  %v430_v32 = vld [vmem:[#allocation2 + $0x258] sm:$0xff] }
 0x13f   :  { %316 = vmatpush.msrb.mxu1 %v298_v34 }
 0x141   :  { %317 = vmatpush.msrb.mxu1 %v297_v35 }
 0x143   :  { %318 = vmatpush.msrb.mxu1 %v296_v36 }
 0x144   :  { %792 = vmatmul.msk.f32.vlgmr.msrb.gmra.mxu1 %vm139_vm0, %v1042_v37 }
 0x145   :  { %557 = vmatpush.msra.mxu1 %v497_v38 }
 0x147   :  { %558 = vmatpush.msra.mxu1 %v495_v39 }
 0x149   :  { %559 = vmatpush.msra.mxu1 %v493_v40  ;;  %v516_v40 = vpop.f32.mrf.mxu2 }
 0x14b   :  { %560 = vmatpush.msra.mxu1 %v491_v41 }
 0x14c   :  { %798 = vmatmul.msk.f32.vlgmr.msra.gmra.mxu1 %vm139_vm0, %v940_v45  ;;  %v442_v45 = vld [vmem:[#allocation2 + $0x2b8] sm:$0xff] }
 0x14d   :  { %591 = vmatpush.msrb.mxu1 %v490_v42 }
 0x14f   :  { %592 = vmatpush.msrb.mxu1 %v488_v44 }
 0x151   :  { %593 = vmatpush.msrb.mxu1 %v486_v46 }
 0x153   :  { %594 = vmatpush.msrb.mxu1 %v484_v47 }
 0x154   :  { %799 = vmatmul.msk.f32.gmra.mxu1 %vm139_vm0, %v962_v5  ;;  %v1087_v5 = vld [vmem:[%s1144_s6] sm:$0xff] }
 0x155   :  { %595 = vmatpush.msrb.mxu1 %v482_v48 }
 0x157   :  { %596 = vmatpush.msrb.mxu1 %v480_v50  ;;  %v519_v50 = vpop.f32.mrf.mxu2 }
 0x159   :  { %597 = vmatpush.msrb.mxu1 %v478_v51 }
 0x15b   :  { %598 = vmatpush.msrb.mxu1 %v476_v52 }
 0x15d   :  { %599 = vmatpush.msrb.mxu1 %v474_v54 }
 0x15f   :  { %600 = vmatpush.msrb.mxu1 %v472_v57  ;;  %v631_v2 = vpop.f32.mrf.mxu2 }
 0x161   :  { %601 = vmatpush.msrb.mxu1 %v470_v60 }
 0x163   :  { %602 = vmatpush.msrb.mxu1 %v468_v1 }
 0x165   :  { %603 = vmatpush.msrb.mxu1 %v466_v7 }
 0x167   :  { %604 = vmatpush.msrb.mxu1 %v464_v10 }
 0x169   :  { %605 = vmatpush.msrb.mxu1 %v462_v12 }
 0x16b   :  { %606 = vmatpush.msrb.mxu1 %v1064_v13 }
 0x16c   :  { %607 = vmatmul.f32.vlgmr.msrb.gmra.mxu1 %v971_v8  ;;  %v432_v8 = vld [vmem:[#allocation2 + $0x268] sm:$0xff] }
 0x174   :  { %610 = vmatmul.f32.gmra.mxu1 %v990_v19 }
 0x1c1   :  { %v320_v56 = vpop.f32.mrf.mxu1 }
 0x1c2   :  { %v321_v58 = vadd.f32 %v320_v56, %v1053_v53 }
 0x1c4   :  { %v323_v62 = vmax.f32 %v321_v58, 0.0  ;;  %v539_v58 = vpop.f32.mrf.mxu0 }
 0x1c6   :  { %793 = vmatpush.msk.msrb.mxu3 %vm331_vm1, %v323_v62 }
 0x1c7   :  { %794 = vmatmul.msk.f32.vlgmr.msrb.gmra.mxu3 %vm324_vm2, %v1059_v63 }
 0x1c8   :  { %568 = vmatpush.msra.mxu3 %v458_v0  ;;  %v517_v0 = vadd.f32 %v516_v40, %v1023_v55 }
 0x1c9   :  { %v562_v38 = vpop.f32.mrf.mxu1 }
 0x1ca   :  { %569 = vmatpush.msra.mxu3 %v456_v6  ;;  %v540_v7 = vadd.f32 %v539_v58, %v517_v0 }
 0x1cc   :  { %570 = vmatpush.msra.mxu3 %v454_v43  ;;  %v1098_v10 = vadd.f32 %v562_v38, %v540_v7  ;;  %v520_v43 = vadd.f32 %v519_v50, %v1019_v3  ;;  %v542_v14 = vpop.f32.mrf.mxu0 }
 0x1ce   :  { %571 = vmatpush.msra.mxu3 %v452_v59 }
 0x1cf   :  { %795 = vmatmul.msk.f32.gmra.mxu3 %vm324_vm2, %v1070_v15 }
 0x1d0   :  { %572 = vmatpush.msra.mxu3 %v450_v17 }
 0x1d1   :  { %v565_v44 = vpop.f32.mrf.mxu1 }
 0x1d2   :  { %573 = vmatpush.msra.mxu3 %v448_v21 }
 0x1d4   :  { %574 = vmatpush.msra.mxu3 %v446_v23  ;;  %v543_v23 = vadd.f32 %v542_v14, %v520_v43 }
 0x1d6   :  { %575 = vmatpush.msra.mxu3 %v444_v27 }
 0x1d8   :  { %576 = vmatpush.msra.mxu3 %v442_v45  ;;  %v1106_v45 = vadd.f32 %v565_v44, %v543_v23 }
 0x1da   :  { %577 = vmatpush.msra.mxu3 %v440_v29 }
 0x1dc   :  { %578 = vmatpush.msra.mxu3 %v438_v30  ;;  %v637_v30 = vadd.f32 %v1064_v13, %v1000_v28  ;;  %v642_v28 = vpop.xlane.xlu2 %641 }
 0x1de   :  { %579 = vmatpush.msra.mxu3 %v436_v24 }
 0x1e0   :  { %580 = vmatpush.msra.mxu3 %v434_v31 }
 0x1e2   :  { %581 = vmatpush.msra.mxu3 %v432_v8 }
 0x1e4   :  { %582 = vmatpush.msra.mxu3 %v430_v32 }
 0x1e6   :  { %583 = vmatpush.msra.mxu3 %v428_v33 }
 0x1e7   :  { %584 = vmatmul.f32.vlgmr.msra.gmra.mxu3 %v957_v4  ;;  %v1093_v4 = vld [vmem:[%s1144_s6 + $0x8] sm:$0xff]  ;;  %s888_s6 = smov [#allocation5]  }
 0x1e8   :  { %s773_s8 = sshll.u32 %s888_s6, 4  ;;  %s774_s8 = int_to_ptr.vmem [resolvable:$true] %s773_s8 }
 0x1e9   :  { %v608_v62 = vpop.f32.mrf.mxu1 }
 0x1ef   :  { %587 = vmatmul.f32.gmra.mxu3 %v982_v16 }
 0x1f1   :  { %v611_v17 = vpop.f32.mrf.mxu1 }
 0x24a   :  { %v352_v19 = vpop.f32.mrf.mxu3 }
 0x24b   :  { %v353_v34 = vadd.f32 %v352_v19, %v1087_v5 }
 0x24d   :  { %v796_v35 = vmul.f32 -1.442695, %v353_v34 }
 0x24f   :  { %816 = vpow2.f32 %v796_v35 }
 0x252   :  { %v355_v16 = vpop.f32.mrf.mxu3 }
 0x253   :  { %v356_v51 = vadd.f32 %v355_v16, %v1093_v4 }
 0x255   :  { %v817_v36 = vpop.eup %816  ;;  %v797_v57 = vmul.f32 -1.442695, %v356_v51 }
 0x256   :  { %v364_v39 = vadd.f32 1.0, %v817_v36 }
 0x258   :  { %818 = vrcp.f32 %v364_v39  ;;  %v377_v46 = vand.u32 2147483648, %v364_v39  ;;  %vm371_vm3 = vweird.f32 %v364_v39  ;;  %v375_v48 = vand.u32 2147483647, %v364_v39 }
 0x259   :  { %820 = vpow2.f32 %v797_v57 }
 0x25a   :  { %v378_v54 = vor.u32 1.1754944e-38, %v377_v46  ;;  %vm376_vm6 = vcmp.eq.f32.partialorder %v375_v48, 8.507059e+37  ;;  %v650_v48 = vmul.f32 0.00390625, %v642_v28 }
 0x25e   :  { %v819_v41 = vpop.eup %818 }
 0x25f   :  { %v367_v42 = vmul.f32 %v819_v41, %v364_v39  ;;  %vm372_vm4 = vweird.f32 %v819_v41  ;;  %v821_v12 = vpop.eup %820 }
 0x260   :  { %vm373_vm5 = vmor %vm371_vm3, %vm372_vm4  ;;  %v365_v21 = vadd.f32 1.0, %v821_v12 }
 0x261   :  { %v368_v47 = vsub.f32 1.0, %v367_v42 }
 0x262   :  { %822 = vrcp.f32 %v365_v21  ;;  %vm386_vm7 = vweird.f32 %v365_v21  ;;  %v392_v33 = vand.u32 2147483648, %v365_v21  ;;  %v390_v34 = vand.u32 2147483647, %v365_v21 }
 0x263   :  { %v369_v52 = vmul.f32 %v819_v41, %v368_v47 }
 0x264   :  { %v393_v35 = vor.u32 1.1754944e-38, %v392_v33  ;;  %vm391_vm10 = vcmp.eq.f32.partialorder %v390_v34, 8.507059e+37 }
 0x265   :  { %v370_v56 = vadd.f32 %v819_v41, %v369_v52 }
 0x267   :  { %v374_v60 = vsel %vm373_vm5, %v819_v41, %v370_v56 }
 0x268   :  { %v379_v61 = vsel %vm376_vm6, %v378_v54, %v374_v60  ;;  %v823_v31 = vpop.eup %822 }
 0x269   :  { %406 = vperm.xlu2 %814, %v379_v61   ;;  %v382_v8 = vmul.f32 %v823_v31, %v365_v21  ;;  %vm387_vm8 = vweird.f32 %v823_v31 }
 0x26a   :  { %v585_v1 = vpop.f32.mrf.mxu3  ;;  %vm388_vm9 = vmor %vm386_vm7, %vm387_vm8 }
 0x26b   :  { %v586_v6 = vadd.f32 %v585_v1, %v1023_v55  ;;  %v634_v55 = vpop.f32.mrf.mxu2 }
 0x26d   :  { %v609_v9 = vadd.f32 %v608_v62, %v586_v6 }
 0x26f   :  { %v1100_v11 = vadd.f32 %v631_v2, %v609_v9 }
 0x271   :  { %v643_v49 = vadd.f32 %v1100_v11, %v1098_v10 }
 0x272   :  { %v588_v59 = vpop.f32.mrf.mxu3 }
 0x273   :  { %v589_v22 = vadd.f32 %v588_v59, %v1019_v3  ;;  %644 = vadd.xlane.f32.xlu1 %v643_v49  ;;  %v383_v3 = vsub.f32 1.0, %v382_v8 }
 0x275   :  { %v612_v27 = vadd.f32 %v611_v17, %v589_v22  ;;  %v384_v32 = vmul.f32 %v823_v31, %v383_v3 }
 0x277   :  { %v1108_v29 = vadd.f32 %v634_v55, %v612_v27  ;;  %v385_v19 = vadd.f32 %v823_v31, %v384_v32 }
 0x279   :  { %v646_v24 = vadd.f32 %v1108_v29, %v1106_v45  ;;  %v389_v36 = vsel %vm388_vm9, %v823_v31, %v385_v19 }
 0x27a   :  { %v394_v38 = vsel %vm391_vm10, %v393_v35, %v389_v36 }
 0x27b   :  { %647 = vadd.xlane.f32.xlu0 %v646_v24  ;;  %638 = vadd.xlane.f32.xlu1 %v637_v30 }
 0x294   :  { %411 = vperm.xlu1 %815, %v394_v38  }
 0x2c3   :  { %v407_v13 = vpop.permute.xlu2 %406 }
 0x2c4   :  { %v414_v39 = vmul.f32 %v407_v13, %v1035_v26  ;;  %v415_v40 = vmul.f32 %v407_v13, %v1033_v25 }
 0x2c6   :  { %v418_v41 = vmax.f32 %v414_v39, 0.0  ;;  %v419_v16 = vmax.f32 %v415_v40, 0.0 }
 0x2c8   :  { %422 = vst [vmem:[#allocation5 + $0x20] sm:$0xff] %v418_v41 }
 0x2c9   :  { %423 = vst [vmem:[#allocation5 + $0x28] sm:$0xff] %v419_v16 }
 0x2e6   :  { %v645_v42 = vpop.xlane.xlu1 %644 }
 0x2e7   :  { %v651_v50 = vmul.f32 0.00390625, %v645_v42 }
 0x2ee   :  { %v648_v44 = vpop.xlane.xlu0 %647  ;;  %v639_v47 = vpop.xlane.xlu1 %638 }
 0x2ef   :  { %v652_v46 = vmul.f32 0.00390625, %v648_v44  ;;  %v649_v51 = vmul.f32 0.00390625, %v639_v47 }
 0x2f1   :  { %665 = vmatpush.msrb.mxu0 %v652_v46 }
 0x2f3   :  { %666 = vmatpush.msrb.mxu0 %v651_v50 }
 0x2f5   :  { %667 = vmatpush.msrb.mxu0 %v650_v48 }
 0x2f7   :  { %668 = vmatpush.msrb.mxu0 %v649_v51 }
 0x2f8   :  { %802 = vmatmul.msk.f32.vlgmr.msrb.gmra.mxu0 %vm139_vm0, %v1042_v37 }
 0x306   :  { %v412_v26 = vpop.permute.xlu1 %411 }
 0x307   :  { %v416_v25 = vmul.f32 %v412_v26, %v1029_v20  ;;  %v417_v52 = vmul.f32 %v412_v26, %v1027_v18 }
 0x309   :  { %v420_v54 = vmax.f32 %v416_v25, 0.0  ;;  %v421_v56 = vmax.f32 %v417_v52, 0.0 }
 0x30b   :  { %424 = vst [vmem:[#allocation5 + $0x30] sm:$0xff] %v420_v54 }
 0x30c   :  { %425 = vst [vmem:[#allocation5 + $0x38] sm:$0xff] %v421_v56 }
 0x375   :  { %v670_v57 = vpop.f32.mrf.mxu0 }
 0x376   :  { %v671_v58 = vadd.f32 %v670_v57, %v1053_v53 }
 0x378   :  { %v673_v60 = vmax.f32 %v671_v58, 0.0 }
 0x37a   :  { %803 = vmatpush.msk.msrb.mxu3 %vm331_vm1, %v673_v60 }
 0x37b   :  { %804 = vmatmul.msk.f32.vlgmr.msrb.gmra.mxu3 %vm324_vm2, %v1059_v63 }
 0x383   :  { %805 = vmatmul.msk.f32.gmra.mxu3 %vm324_vm2, %v1070_v15 }
 0x3fe   :  { %v694_v37 = vpop.f32.mrf.mxu3 }
 0x3ff   :  { %v695_v20 = vadd.f32 %v694_v37, %v1087_v5 }
 0x401   :  { %v806_v18 = vmul.f32 -1.442695, %v695_v20 }
 0x403   :  { %824 = vpow2.f32 %v806_v18 }
 0x406   :  { %v697_v61 = vpop.f32.mrf.mxu3 }
 0x407   :  { %v698_v62 = vadd.f32 %v697_v61, %v1093_v4 }
 0x409   :  { %v825_v0 = vpop.eup %824  ;;  %v807_v1 = vmul.f32 -1.442695, %v698_v62 }
 0x40a   :  { %v706_v53 = vadd.f32 1.0, %v825_v0 }
 0x40b   :  { %826 = vpow2.f32 %v807_v1 }
 0x40c   :  { %828 = vrcp.f32 %v706_v53  ;;  %v719_v15 = vand.u32 2147483648, %v706_v53  ;;  %v717_v5 = vand.u32 2147483647, %v706_v53  ;;  %vm713_vm12 = vweird.f32 %v706_v53 }
 0x40e   :  { %v720_v4 = vor.u32 1.1754944e-38, %v719_v15  ;;  %vm718_vm14 = vcmp.eq.f32.partialorder %v717_v5, 8.507059e+37 }
 0x411   :  { %v827_v2 = vpop.eup %826 }
 0x412   :  { %v829_v6 = vpop.eup %828  ;;  %v707_v7 = vadd.f32 1.0, %v827_v2 }
 0x413   :  { %v709_v63 = vmul.f32 %v829_v6, %v706_v53  ;;  %vm714_vm11 = vweird.f32 %v829_v6 }
 0x414   :  { %830 = vrcp.f32 %v707_v7  ;;  %vm715_vm13 = vmor %vm713_vm12, %vm714_vm11  ;;  %v734_v22 = vand.u32 2147483648, %v707_v7  ;;  %v732_v23 = vand.u32 2147483647, %v707_v7  ;;  %vm728_vm0 = vweird.f32 %v707_v7 }
 0x415   :  { %v710_v9 = vsub.f32 1.0, %v709_v63 }
 0x416   :  { %v735_v30 = vor.u32 1.1754944e-38, %v734_v22  ;;  %vm733_vm2 = vcmp.eq.f32.partialorder %v732_v23, 8.507059e+37 }
 0x417   :  { %v711_v12 = vmul.f32 %v829_v6, %v710_v9 }
 0x419   :  { %v712_v43 = vadd.f32 %v829_v6, %v711_v12 }
 0x41a   :  { %v831_v14 = vpop.eup %830 }
 0x41b   :  { %v716_v49 = vsel %vm715_vm13, %v829_v6, %v712_v43  ;;  %v724_v59 = vmul.f32 %v831_v14, %v707_v7  ;;  %vm729_vm15 = vweird.f32 %v831_v14 }
 0x41c   :  { %v721_v17 = vsel %vm718_vm14, %v720_v4, %v716_v49  ;;  %vm730_vm1 = vmor %vm728_vm0, %vm729_vm15 }
 0x41d   :  { %749 = vperm.xlu2 %814, %v721_v17   ;;  %v725_v21 = vsub.f32 1.0, %v724_v59 }
 0x41f   :  { %v726_v55 = vmul.f32 %v831_v14, %v725_v21 }
 0x421   :  { %v727_v27 = vadd.f32 %v831_v14, %v726_v55 }
 0x423   :  { %v731_v24 = vsel %vm730_vm1, %v831_v14, %v727_v27 }
 0x424   :  { %v736_v31 = vsel %vm733_vm2, %v735_v30, %v731_v24 }
 0x425   :  { %754 = vperm.xlu2 %814, %v736_v31  }
 0x477   :  { %v750_v8 = vpop.permute.xlu2 %749 }
 0x478   :  { %v757_v3 = vmul.f32 %v750_v8, %v1098_v10  ;;  %v758_v32 = vmul.f32 %v750_v8, %v1100_v11 }
 0x47a   :  { %v761_v33 = vmax.f32 %v757_v3, 0.0  ;;  %v762_v19 = vmax.f32 %v758_v32, 0.0 }
 0x47c   :  { %765 = vst [vmem:[#allocation5 + $0x60] sm:$0xff] %v761_v33 }
 0x47d   :  { %766 = vst [vmem:[#allocation5 + $0x68] sm:$0xff] %v762_v19 }
 0x47f   :  { %v755_v34 = vpop.permute.xlu2 %754 }
 0x480   :  { %v759_v35 = vmul.f32 %v755_v34, %v1106_v45  ;;  %v760_v36 = vmul.f32 %v755_v34, %v1108_v29 }
 0x482   :  { %v763_v38 = vmax.f32 %v759_v35, 0.0  ;;  %v764_v28 = vmax.f32 %v760_v36, 0.0 }
 0x484   :  { %767 = vst [vmem:[#allocation5 + $0x70] sm:$0xff] %v763_v38 }
 0x485   :  { %768 = vst [vmem:[#allocation5 + $0x78] sm:$0xff] %v764_v28 }
 0x486   :  { %781 = dma.vmem_to_hbm [thread:$0]  %s774_s8, 2048, %s776_s11, [#allocation4], %s885_s29, %s885_s29, %s886_s30  }
 0x487   :  { %882 = dma.done.wait [#allocation4], 2048  }
 0x488   :  { %883 = vsyncadd [#allocation4], 4294965248 }
 0x489   :  { %786 = vsyncpa [#allocation3], 1 }
 0x48a   :  { %787 = vsyncpa [#allocation4], 1 }

</bundles_post_ra>
